<compile_context>
chip_gen: v5e
topology: v5e:2x2
jax: 0.10.0
libtpu: 0.0.40
codegen_flags: <defaults>
</compile_context>

<pallas_src>
import math
import jax
import jax.numpy as jnp
from jax.experimental import pallas as pl
from jax.experimental.pallas import tpu as pltpu


def _token_embedding_kernel(x_ref, w_ref, b_ref, o_ref):
    # x_ref: (bt, L, c_in)     input tile, channels-last, in x.dtype
    # w_ref: (3*c_in, dn)      fused tap weights, rows ordered [t-1 | t | t+1] taps
    # b_ref: (1, dn)           bias (f32)
    # o_ref: (bt, L, dn)
    bt, seq_len, c_in = x_ref.shape
    dn = o_ref.shape[-1]
    w = w_ref[...]
    bias = b_ref[...]

    if bt == 1:
        # Single-batch tile: stay fully 2-D (simplest, lane-dense layouts).
        x = x_ref[0]                                              # (L, c_in)
        taps = jnp.concatenate(
            [pltpu.roll(x, shift=1, axis=0),                      # x[t-1] (circular)
             x,                                                   # x[t]
             pltpu.roll(x, shift=seq_len - 1, axis=0)],           # x[t+1] (circular)
            axis=-1)                                              # (L, 3*c_in)
        y = jnp.dot(taps, w, preferred_element_type=jnp.float32) + bias
        o_ref[0] = y.astype(o_ref.dtype)
        return

    # Multi-batch tile: hoist rolls / concat out of any per-batch work (2 XLU ops total).
    x = x_ref[...]                                                # (bt, L, c_in)
    taps = jnp.concatenate(
        [pltpu.roll(x, shift=1, axis=1),
         x,
         pltpu.roll(x, shift=seq_len - 1, axis=1)],
        axis=-1)                                                  # (bt, L, 3*c_in)
    if seq_len % 8 == 0:
        # One big MXU matmul over the flattened (bt*L, 3*c_in) slab; single bias add.
        y = jnp.dot(taps.reshape(bt * seq_len, 3 * c_in), w,
                    preferred_element_type=jnp.float32) + bias
        o_ref[...] = y.reshape(bt, seq_len, dn).astype(o_ref.dtype)
    else:
        # Odd L: per-batch 2-D dots (bt is capped small in the wrapper for this path).
        bias_b = jnp.broadcast_to(bias, (seq_len, dn))            # hoisted broadcast
        for b in range(bt):
            y = jnp.dot(taps[b], w, preferred_element_type=jnp.float32) + bias_b
            o_ref[b] = y.astype(o_ref.dtype)


def _round_up(n, m):
    return ((n + m - 1) // m) * m


def _vmem_budget_bytes():
    """Half of physical VMEM (scoped-safe on every generation); conservative fallback."""
    cap = 64 << 20                       # v7x physical (smallest current generation)
    try:
        info = pltpu.get_tpu_info()
        cap = int(getattr(info, "vmem_capacity_bytes", cap) or cap)
    except Exception:
        pass
    return min(cap // 2, 96 << 20)       # v7x -> 32 MiB, v5e/v6e -> 64 MiB


def token_embedding(x, w_token, b_token, *, batch_tile=None, out_dtype=None):
    """Circular Conv1d token embedding.

    x:        (B, L, c_in)           activations (any float dtype; NOT up-cast)
    w_token:  (d_model, c_in, 3)     torch Conv1d weight layout
    b_token:  (d_model,)             conv bias
    returns:  (B, L, d_model) in out_dtype (default: x.dtype)
    """
    B, L, c_in = x.shape
    d_model = w_token.shape[0]
    if out_dtype is None:
        out_dtype = x.dtype

    # torch (out, in, k) -> fused (k*in, out), row k*c_in + c = w[d, c, k], matching the
    # in-kernel tap order [x[t-1] | x[t] | x[t+1]].
    w = jnp.transpose(w_token, (2, 1, 0)).reshape(3 * c_in, d_model).astype(x.dtype)
    bias = b_token.reshape(1, d_model).astype(jnp.float32)

    # d_model tile: full if small, else an MXU-friendly 128-multiple divisor.
    if d_model <= 512:
        dn = d_model
    else:
        dn = next((t for t in (512, 256, 128) if d_model % t == 0), d_model)
    grid_n = d_model // dn

    # --- VMEM-aware batch tile (accounts for lane=128 / sublane padding of each block) ---
    in_item = jnp.dtype(x.dtype).itemsize
    out_item = jnp.dtype(out_dtype).itemsize
    sub_in = max(8, 32 // in_item)            # sublane packing: f32 -> 8, bf16 -> 16
    sub_out = max(8, 32 // out_item)
    x_block_b = _round_up(L, sub_in) * _round_up(c_in, 128) * in_item      # per batch elem
    o_block_b = _round_up(L, sub_out) * _round_up(dn, 128) * out_item
    w_block_b = _round_up(3 * c_in, sub_in) * _round_up(dn, 128) * in_item
    b_block_b = 8 * _round_up(dn, 128) * 4

    budget = _vmem_budget_bytes()
    tile_budget = int(budget * 0.75) - 2 * (w_block_b + b_block_b) - (2 << 20)
    if batch_tile is None:
        batch_tile = max(1, tile_budget // (2 * (x_block_b + o_block_b)))  # double-buffered
        if B > 1:
            batch_tile = min(batch_tile, (B + 1) // 2)   # >= 2 batch steps (2 TCs on v7x)
        batch_tile = min(batch_tile, max(B, 1))
        if L % 8 != 0:
            batch_tile = min(batch_tile, 8)              # static per-batch unroll path
    batch_tile = max(1, int(batch_tile))

    # Pad the batch (instead of shrinking the tile) when B is not a tile multiple.
    B_pad = _round_up(B, batch_tile)
    x_in = x if B_pad == B else jnp.pad(x, ((0, B_pad - B), (0, 0), (0, 0)))
    grid_b = B_pad // batch_tile

    out = pl.pallas_call(
        _token_embedding_kernel,
        out_shape=jax.ShapeDtypeStruct((B_pad, L, d_model), out_dtype),
        grid_spec=pltpu.PrefetchScalarGridSpec(
            num_scalar_prefetch=0,
            grid=(grid_b, grid_n),
            in_specs=[
                pl.BlockSpec((batch_tile, L, c_in), lambda i, j: (i, 0, 0)),
                pl.BlockSpec((3 * c_in, dn), lambda i, j: (0, j)),
                pl.BlockSpec((1, dn), lambda i, j: (0, j)),
            ],
            out_specs=pl.BlockSpec((batch_tile, L, dn), lambda i, j: (i, 0, j)),
        ),
        compiler_params=pltpu.CompilerParams(
            dimension_semantics=("parallel", "parallel"),
            vmem_limit_bytes=int(budget),
        ),
    )(x_in, w, bias)
    # NOTE: for production d_model (multiple of 128) the output store is lane-dense;
    # toy d_model=32 in the test accepts masked stores.
    return out if B_pad == B else out[:B]


def _reference(x, w_token, b_token):
    """Pure-JAX reference: explicit circular-padded taps in NCL layout, like PyTorch."""
    B, L, c_in = x.shape
    d_model = w_token.shape[0]
    x_ncl = jnp.transpose(x, (0, 2, 1)).astype(jnp.float32)          # (B, c_in, L)
    x_pad = jnp.pad(x_ncl, ((0, 0), (0, 0), (1, 1)), mode='wrap')    # circular padding=1
    out = jnp.zeros((B, d_model, L), jnp.float32)
    for k in range(3):
        out = out + jnp.einsum('bcl,dc->bdl', x_pad[:, :, k:k + L],
                               w_token[:, :, k].astype(jnp.float32))
    out = out + b_token[None, :, None]
    return jnp.transpose(out, (0, 2, 1))                             # (B, L, d_model)


if __name__ == "__main__":
    B, L, c_in, d_model = 2, 8, 4, 32
    key = jax.random.PRNGKey(0)
    kx, kw, kb = jax.random.split(key, 3)

    x = jax.random.normal(kx, (B, L, c_in), jnp.float32)

    # Conv1d init: kaiming_normal_(fan_in, leaky_relu) weight, uniform(+/-1/sqrt(fan_in)) bias.
    fan_in = c_in * 3
    std = math.sqrt(2.0) / math.sqrt(fan_in)
    w_token = std * jax.random.normal(kw, (d_model, c_in, 3), jnp.float32)
    b_token = (1.0 / math.sqrt(fan_in)) * jax.random.uniform(
        kb, (d_model,), jnp.float32, -1.0, 1.0)

    out = token_embedding(x, w_token, b_token)
    out = jax.block_until_ready(out)

    ref = _reference(x, w_token, b_token)
    assert out.shape == (B, L, d_model)
    assert jnp.allclose(out, ref, atol=1e-4, rtol=1e-4), "mismatch vs reference"
    print("KERNEL_OK")
</pallas_src>

<mosaic_0001>
module attributes {stable_mosaic.version = 11 : i64} {
  func.func @_token_embedding_kernel(%arg0: i32, %arg1: i32, %arg2: memref<1x8x4xf32, #tpu.memory_space<vmem>>, %arg3: memref<12x32xf32, #tpu.memory_space<vmem>>, %arg4: memref<1x32xf32, #tpu.memory_space<vmem>>, %arg5: memref<1x8x32xf32, #tpu.memory_space<vmem>>) attributes {dimension_semantics = [#tpu.dimension_semantics<parallel>, #tpu.dimension_semantics<parallel>], iteration_bounds = array<i64: 2, 1>, scalar_prefetch = 0 : i64, scratch_operands = 0 : i64, tpu.core_type = #tpu.core_type<tc>, window_params = [{transform_indices = @transform_0, window_bounds = array<i64: 1, 8, 4>}, {transform_indices = @transform_1, window_bounds = array<i64: 12, 32>}, {transform_indices = @transform_2, window_bounds = array<i64: 1, 32>}, {transform_indices = @transform_3, window_bounds = array<i64: 1, 8, 32>}]} {
    %c0 = arith.constant 0 : index
    %c0_0 = arith.constant 0 : index
    %0 = vector.load %arg3[%c0, %c0_0] : memref<12x32xf32, #tpu.memory_space<vmem>>, vector<12x32xf32>
    %c0_1 = arith.constant 0 : index
    %c0_2 = arith.constant 0 : index
    %1 = vector.load %arg4[%c0_1, %c0_2] : memref<1x32xf32, #tpu.memory_space<vmem>>, vector<1x32xf32>
    %c0_3 = arith.constant 0 : index
    %c0_4 = arith.constant 0 : index
    %c0_5 = arith.constant 0 : index
    %2 = vector.load %arg2[%c0_3, %c0_4, %c0_5] : memref<1x8x4xf32, #tpu.memory_space<vmem>>, vector<1x8x4xf32>
    %3 = vector.shape_cast %2 : vector<1x8x4xf32> to vector<8x4xf32>
    %c1_i32 = arith.constant 1 : i32
    %4 = tpu.dynamic_rotate %3 by %c1_i32 dim 0 : vector<8x4xf32>, i32 -> vector<8x4xf32>
    %c7_i32 = arith.constant 7 : i32
    %5 = tpu.dynamic_rotate %3 by %c7_i32 dim 0 : vector<8x4xf32>, i32 -> vector<8x4xf32>
    %6 = tpu.concatenate %4, %3, %5 in 1 : vector<8x4xf32>, vector<8x4xf32>, vector<8x4xf32> -> vector<8x12xf32>
    %cst = arith.constant dense<0.000000e+00> : vector<8x32xf32>
    %7 = tpu.matmul %6, %0, %cst {dimension_numbers = #tpu.dot_dimension_numbers<[1], [0], [0], [1], [0, 0, 1, 1], [], []>} : vector<8x12xf32>, vector<12x32xf32>, vector<8x32xf32> -> vector<8x32xf32>
    %8 = vector.broadcast %1 : vector<1x32xf32> to vector<8x32xf32>
    %9 = arith.addf %7, %8 : vector<8x32xf32>
    %c0_6 = arith.constant 0 : index
    %c0_7 = arith.constant 0 : index
    %c0_8 = arith.constant 0 : index
    %10 = vector.load %arg5[%c0_6, %c0_7, %c0_8] : memref<1x8x32xf32, #tpu.memory_space<vmem>>, vector<1x8x32xf32>
    %11 = vector.shape_cast %10 : vector<1x8x32xf32> to vector<8x32xf32>
    %12 = vector.shape_cast %9 : vector<8x32xf32> to vector<1x8x32xf32>
    tpu.vector_store %arg5[%c0_6, %c0_7, %c0_8], %12 {strides = array<i32>} : memref<1x8x32xf32, #tpu.memory_space<vmem>>, vector<1x8x32xf32>,
    return
  }
  func.func @transform_0(%arg0: i32, %arg1: i32) -> (i32, i32, i32) {
    %c0_i32 = arith.constant 0 : i32
    %c0_i32_0 = arith.constant 0 : i32
    %c0_i32_1 = arith.constant 0 : i32
    return %arg0, %c0_i32, %c0_i32_0 : i32, i32, i32
  }
  func.func @transform_1(%arg0: i32, %arg1: i32) -> (i32, i32) {
    %c0_i32 = arith.constant 0 : i32
    %c0_i32_0 = arith.constant 0 : i32
    return %c0_i32, %arg1 : i32, i32
  }
  func.func @transform_2(%arg0: i32, %arg1: i32) -> (i32, i32) {
    %c0_i32 = arith.constant 0 : i32
    %c0_i32_0 = arith.constant 0 : i32
    return %c0_i32, %arg1 : i32, i32
  }
  func.func @transform_3(%arg0: i32, %arg1: i32) -> (i32, i32, i32) {
    %c0_i32 = arith.constant 0 : i32
    %c0_i32_0 = arith.constant 0 : i32
    return %arg0, %c0_i32, %arg1 : i32, i32, i32
  }
}

</mosaic_0001>

<bundles_post_ra>
// kernel: tpu_custom_call.1
= control target key start
LH: loop header
LB: loop body
LE: loop exit
PB: predicated region body
PF: predicated region fallthrough
CT: control target
= control target key end

     0   :  { %8 = vsyncpa [#allocation3], 0  ;;  %s655_s0 = inlined_call_operand.vmem [shape: f32[2,8,4], index: 0, kind: input, shape index: {}]   ;;  %s656_s1 = inlined_call_operand.vmem [shape: f32[12,32], index: 1, kind: input, shape index: {}]   ;;  %s657_s2 = inlined_call_operand.vmem [shape: f32[1,32], index: 2, kind: input, shape index: {}]   ;;  %s658_s3 = inlined_call_operand.hbm [shape: f32[2,8,32], index: 3, kind: output, shape index: {}]  }
   0x1   :  { %10 = vsyncpa [#allocation3 + $0x1], 0  ;;  %s549_s12 = smov 0   ;;  %s551_s13 = smov 0  }
   0x2   :  { %s553_s14 = smov 0   ;;  %s555_s15 = smov 0  }
   0x3   :  { %s557_s16 = smov 0   ;;  %s559_s17 = smov 0  }
   0x4 LB: > { %s374_s18 = sadd.s32 4294967295, %s525_s17   ;;  %s375_s19 = sadd.s32 4294967294, %s525_s17   ;;  %s525_s17 = sphi %s559_s17, %s16_s17   ;;  %s521_s16 = sphi %s557_s16, %s665_s16   ;;  %s517_s15 = sphi %s555_s15, %s664_s15   ;;  %s513_s14 = sphi %s553_s14, %s663_s14   ;;  %s509_s13 = sphi %s551_s13, %s662_s13   ;;  %s505_s12 = sphi %s549_s12, %s661_s12  }
   0x5   : > { %s28_s20 = sadd.s32 1, %s521_s16  ;;  %s115_s21 = sadd.s32 1, %s513_s14 }
   0x6   : > { %p30_p0 = scmp.ge.s32.totalorder %s28_s20, 2  ;;  %p125_p1 = scmp.ne.s32.totalorder %s513_s14, %s509_s13 }
   0x7   : > { %p126_p2 = scmp.eq.s32.totalorder %s374_s18, 1  ;;  %p131_p3 = scmp.ne.s32.totalorder %s509_s13, %s505_s12 }
   0x8   : > { %s667_s20 = smov (%p30_p0, %s28_s20), 0  ;;  %p132_p5 = scmp.eq.s32.totalorder %s375_s19, 1 }
   0x9   : > { %p589_p4 = por %p126_p2, %p125_p1  ;;  %s110_s23 = ssub.s32 %s521_s16, %s667_s20 }
   0xa   : > { %p380_p6 = scmp.ge.s32.totalorder %s525_s17, 1  ;;  %p113_p7 = scmp.eq.s32.totalorder %s110_s23, 0 }
   0xb   : > { %p596_p8 = por %p132_p5, %p131_p3  ;;  %p170_p9 = scmp.lt.s32.totalorder %s525_s17, 3 }
   0xc   : > { %s602_s25 = scalar_select %p113_p7, %s513_s14, %s115_s21  }
   0xd   : > { %p171_p10 = pnand %p380_p6, %p170_p9 }
   0xe   : > { %p200_p11 = scmp.lt.s32.totalorder (!%p171_p10), %s517_s15, 1  ;;  %s527_s4 = smov (!%p171_p10), 4  }
   0xf   : > { %174 = sbr.rel (%p171_p10) target bundleno = 280 (0x118), region = 32  ;;  %s528_s5 = smov (!%p171_p10), 8  }
  0x10   : > { %s197_s10 = sand.u32 (!%p171_p10), 1, %s509_s13   ;;  %s386_s18 = sshll.u32 (!%p171_p10), %s517_s15, 3 }
  0x11   : > { %s381_s11 = sshll.u32 (!%p171_p10), %s197_s10, 3  ;;  %s274_s23 = scalar_lea.hbm (!%p171_p10), %s658_s3, %s386_s18 }
  0x12   : > { %s199_s28 = scalar_lea.vmem (!%p171_p10), [#allocation2], %s381_s11  ;;  %s467_s8 = scalar_lea.hbm (!%p171_p10), %s658_s3, 16 }
  0x13   : > { %s276_s29 = sshll.u32 (!%p171_p10), %s199_s28, 4  ;;  %s277_s29 = int_to_ptr.vmem [resolvable:$true] %s276_s29 }
  0x14   : > { %s201_s26 = scalar_select %p200_p11, %s517_s15, 1  ;;  %v212_v2 = vld [vmem:[%s656_s1 + $0x8] sm:$0xf]  ;;  %vm236_vm0 = vcmask 1043456   ;;  %v211_v3 = vld [vmem:[%s656_s1] sm:$0xff]  ;;  %vm225_vm1 = vcmask 31744  }
  0x15   : > { %383 = vmatpush.msk.msra.mxu0 %vm236_vm0, %v212_v2  ;;  %vm227_vm2 = vcmask 64512   ;;  %vm232_vm3 = vcmask 97280   ;;  %v446_v9 = vld [vmem:[%s657_s2] ss:$0 sm:$0xff]  ;;  %vm260_vm4 = vcmask 261120  }
  0x16   : > { %s382_s27 = sshll.u32 %s201_s26, 3 }
  0x17   : > { %s203_s30 = scalar_lea.vmem %s655_s0, %s382_s27  ;;  %255 = vmatpush.msra.mxu0 %v211_v3 }
  0x18   : > { %v214_v0 = vld [vmem:[%s203_s30] sm:$0xff]  ;;  %s278_s30 = sshll.u32 %s274_s23, 4  ;;  %s279_s30 = int_to_ptr.hbm [resolvable:$true] %s278_s30 }
  0x19   : > { %218 = vrot.lane.b32.xlu0 %v214_v0, %s527_s4  ;;  %v216_v1 = vrot.slane %v214_v0, 1  ;;  %v215_v5 = vrot.slane %v214_v0, 7  ;;  %s263_s4 = scalar_lea.sflag [#allocation3], %s197_s10  ;;  %s461_s15 = sshra.s32 %s279_s30, 4  ;;  %s462_s15 = int_to_ptr.hbm [resolvable:$true] %s461_s15 }
  0x1a   : > { %p468_p1 = scmp.lt.s32.totalorder %s462_s15, %s658_s3 }
  0x21   : > { %222 = vrot.lane.b32.xlu0 %v216_v1, %s528_s5  ;;  %s463_s5 = scalar_lea.hbm %s462_s15, 8 }
  0x22   : > { %p464_p12 = scmp.ne.s32.totalorder %s462_s15, %s463_s5  ;;  %p469_p2 = scmp.lt.s32.totalorder %s467_s8, %s463_s5 }
  0x24   : > { %p465_p13 = pnand %p464_p12, %p589_p4  ;;  %p470_p3 = por %p469_p2, %p468_p1 }
  0x26   : > { %p466_p0 = pneg %p465_p13 }
  0x28   : > { %p471_p5 = pnand %p470_p3, %p466_p0 }
  0x8b   : > { %v219_v4 = vpop.permute.xlu0 %218 }
  0x8c   : > { %v226_v6 = vsel %vm225_vm1, %v215_v5, %v219_v4 }
  0x93   : > { %v223_v7 = vpop.permute.xlu0 %222 }
  0x94   : > { %v228_v8 = vsel %vm227_vm2, %v226_v6, %v223_v7 }
  0x95   : > { %384 = vmatmul.msk.f32.vlgmr.msra.gmra.mxu0 %vm232_vm3, %v228_v8 }
 0x112   : > { %v257_v10 = vpop.f32.mrf.mxu0 }
 0x113   : > { %v258_v11 = vadd.f32 %v446_v9, %v257_v10 }
 0x115   : > { %261 = vst.msk [vmem:[%s199_s28] sm:$0xff] %vm260_vm4, %v258_v11 }
 0x116   : > { %474 = shalt.err (!%p471_p5)
}
 0x117   : > { %389 = dma.vmem_to_hbm [thread:$0]  (%p589_p4), %s277_s29, 128, %s279_s30, %s263_s4  }
 0x118 PF: > { %p395_p6 = scmp.ge.s32.totalorder %s525_s17, 2  ;;  %s290_s10 = sand.u32 1, %s505_s12  }
 0x119   : > { %s291_s18 = scalar_lea.sflag [#allocation3], %s290_s10 }
 0x11a   : > { %p392_p7 = pnand %p395_p6, %p596_p8 }
 0x11c   : > { %p393_p9 = pneg %p392_p7 }
 0x11e   : > { %500 = dma.done.wait (%p393_p9), %s291_s18, 128  }
 0x11f   : > { %502 = vsyncadd (%p393_p9), %s291_s18, 4294967168  ;;  %s16_s17 = sadd.s32 1, %s525_s17   ;;  %s661_s12 = smov %s509_s13 }
 0x120   : > { %p13_p10 = scmp.ge.s32.totalorder %s16_s17, 4   ;;  %s662_s13 = smov %s513_s14 }
 0x121   : > { %s663_s14 = smov %s602_s25  ;;  %s664_s15 = smov %s521_s16 }
 0x122   : > { %s665_s16 = smov %s667_s20  ;;  %15 = sbr.rel (!%p13_p10) target bundleno = 4 (0x4), region = 73 }
 0x127   :  { %297 = vsyncpa [#allocation3], 1 }
 0x128   :  { %299 = vsyncpa [#allocation3 + $0x1], 1 }

</bundles_post_ra>
